<compile_context>
chip_gen: v5e
topology: v5e:2x2
jax: 0.10.0
libtpu: 0.0.40
codegen_flags: <defaults>
</compile_context>

<pallas_src>
import functools

import jax
import jax.numpy as jnp
from jax import lax
from jax.experimental import pallas as pl
from jax.experimental.pallas import tpu as pltpu


def _move_to_center_kernel(params_ref, x_ref, o_ref, *, C, H, W):
    # params_ref : (8, N*W) f32   rows: 0=iy0, 1=fy, 2=ix0, 3=fx, 4=w-index, 5..7=pad
    # x_ref/o_ref: (C*H, N*W)     rows = (c, h), cols = (n, w)   -- lane dense
    CH, NW = x_ref.shape

    iy0 = params_ref[0:1, :].astype(jnp.int32)   # (1, NW) integer row shift per column
    fy = params_ref[1:2, :]                      # (1, NW) row fraction
    ix0 = params_ref[2:3, :].astype(jnp.int32)   # (1, NW) integer col shift per column
    fx = params_ref[3:4, :]                      # (1, NW) col fraction
    wq = params_ref[4:5, :].astype(jnp.int32)    # (1, NW) in-sample column index w

    x = x_ref[...].astype(jnp.float32)           # (C*H, NW)

    # ---------------- H axis: bilinear row shift (VPU select-blend) ----------------
    # out[h, col] = (1-fy)*x[h+iy0, col] + fy*x[h+iy0+1, col], zero outside [0, H).
    h_out = lax.broadcasted_iota(jnp.int32, (H, NW), 0)
    src0 = h_out + jnp.broadcast_to(iy0, (H, NW))            # source row of tap 0
    fy_b = jnp.broadcast_to(fy, (H, NW))
    omfy_b = 1.0 - fy_b

    accs = [jnp.zeros((H, NW), jnp.float32) for _ in range(C)]
    for hs in range(H):                                      # static, H is tiny
        # per-source-row weight, shared by every channel (mutually exclusive taps)
        wgt = jnp.where(src0 == hs, omfy_b,
                        jnp.where(src0 == hs - 1, fy_b, 0.0))   # (H, NW)
        for c in range(C):
            row = x[c * H + hs:c * H + hs + 1, :]            # (1, NW) sublane-broadcast
            accs[c] = accs[c] + wgt * row
    y = accs[0] if C == 1 else jnp.concatenate(accs, axis=0)    # (C*H, NW)

    # ------- W axis: bilinear column shift as ONE block-diagonal MXU matmul --------
    # KX[src_col, out_col] = (1-fx) if src == out+ix0 (valid)
    #                        fx     if src == out+ix0+1 (valid), else 0.
    r = lax.broadcasted_iota(jnp.int32, (NW, NW), 0)         # flat source column
    cc = lax.broadcasted_iota(jnp.int32, (NW, NW), 1)        # flat output column
    diff = r - cc                                            # (NW, NW)

    src_w0 = wq + ix0                                        # (1, NW) in-sample source col
    src_w1 = src_w0 + 1
    valid0 = (src_w0 >= 0) & (src_w0 < W)                    # zero padding + block-diag
    valid1 = (src_w1 >= 0) & (src_w1 < W)

    omfx_b = jnp.broadcast_to(1.0 - fx, (NW, NW))
    fx_b = jnp.broadcast_to(fx, (NW, NW))
    kx = jnp.where((diff == ix0) & valid0, omfx_b,
                   jnp.where((diff == ix0 + 1) & valid1, fx_b, 0.0))  # (NW, NW) f32

    out = jnp.dot(y, kx, preferred_element_type=jnp.float32)        # (C*H, NW)
    o_ref[...] = out.astype(o_ref.dtype)                            # one full-width store


def move_to_center(x, position, num_objects):
    """x: (B, O*C, H, W), position: (B, O*Cp) with Cp >= 2. Returns (B*O, C, H, W)."""
    B, OC, H, W = x.shape
    O = num_objects
    C = OC // O
    Cp = position.shape[1] // O
    N = B * O
    NW = N * W

    # SharedObjectsToBatch + lane-dense repack: rows=(c,h), cols=(n,w) -> (C*H, N*W)
    xb = x.reshape(B, O, C, H, W).reshape(N, C, H, W)
    x_cols = jnp.transpose(xb, (1, 2, 0, 3)).reshape(C * H, NW)

    # Positions -> per-sample sub-pixel shifts (module swaps channels: x<-p1, y<-p0).
    pb = position.reshape(B, O, Cp).reshape(N, Cp)[:, :2].astype(jnp.float32)
    ty = pb[:, 0] * (H * 0.5)
    tx = pb[:, 1] * (W * 0.5)
    iy0 = jnp.clip(jnp.floor(ty), -(H + 1), H)   # clamp keeps fully-OOB fully-OOB
    ix0 = jnp.clip(jnp.floor(tx), -(W + 1), W)
    fy = ty - jnp.floor(ty)
    fx = tx - jnp.floor(tx)

    col = lambda v: jnp.repeat(v, W)             # per-sample -> per-(n,w) output column
    zeros = jnp.zeros((NW,), jnp.float32)
    params = jnp.stack([
        col(iy0), col(fy), col(ix0), col(fx),
        jnp.tile(jnp.arange(W, dtype=jnp.float32), N),   # in-sample w index per column
        zeros, zeros, zeros,
    ], axis=0)                                    # (8, N*W): one clean (8,128)-tile row block

    kern = functools.partial(_move_to_center_kernel, C=C, H=H, W=W)
    out_cols = pl.pallas_call(
        kern,
        out_shape=jax.ShapeDtypeStruct((C * H, NW), x.dtype),
        grid=(1,),                                # single step: no per-sample grid overhead
        in_specs=[
            pl.BlockSpec((8, NW), lambda i: (0, 0)),
            pl.BlockSpec((C * H, NW), lambda i: (0, 0)),
        ],
        out_specs=pl.BlockSpec((C * H, NW), lambda i: (0, 0)),
        compiler_params=pltpu.CompilerParams(dimension_semantics=("arbitrary",)),
    )(params, x_cols)

    # Back to (N, C, H, W).
    return jnp.transpose(out_cols.reshape(C, H, N, W), (2, 0, 1, 3))


# ----------------------- pure-JAX reference (gather based) -----------------------
def _ref_sample_one(x, p0, p1):
    # x: (C, H, W); replicate grid_sample(zeros, bilinear, align_corners=False)
    C, H, W = x.shape
    h = jnp.arange(H, dtype=jnp.float32)
    w = jnp.arange(W, dtype=jnp.float32)
    iy = jnp.broadcast_to(h[:, None] + p0 * (H * 0.5), (H, W))
    ix = jnp.broadcast_to(w[None, :] + p1 * (W * 0.5), (H, W))
    iy0 = jnp.floor(iy).astype(jnp.int32)
    ix0 = jnp.floor(ix).astype(jnp.int32)
    fy = iy - iy0
    fx = ix - ix0

    def get(yy, xx):
        valid = (yy >= 0) & (yy < H) & (xx >= 0) & (xx < W)
        yyc = jnp.clip(yy, 0, H - 1)
        xxc = jnp.clip(xx, 0, W - 1)
        v = x[:, yyc, xxc]
        return jnp.where(valid[None], v, 0.0)

    return ((1 - fy) * (1 - fx))[None] * get(iy0, ix0) \
         + ((1 - fy) * fx)[None] * get(iy0, ix0 + 1) \
         + (fy * (1 - fx))[None] * get(iy0 + 1, ix0) \
         + (fy * fx)[None] * get(iy0 + 1, ix0 + 1)


def move_to_center_ref(x, position, num_objects):
    B, OC, H, W = x.shape
    O = num_objects
    C = OC // O
    Cp = position.shape[1] // O
    N = B * O
    xb = x.reshape(B, O, C, H, W).reshape(N, C, H, W)
    pb = position.reshape(B, O, Cp).reshape(N, Cp)[:, :2].astype(jnp.float32)
    return jax.vmap(_ref_sample_one)(xb, pb[:, 0], pb[:, 1])


if __name__ == "__main__":
    B, O, C, H, W = 2, 4, 1, 16, 16
    key = jax.random.PRNGKey(0)
    k1, k2 = jax.random.split(key)
    x = jax.random.normal(k1, (B, O * C, H, W), dtype=jnp.float32)
    position = jax.random.uniform(k2, (B, O * 2), dtype=jnp.float32,
                                  minval=-1.0, maxval=1.0)

    out = jax.block_until_ready(move_to_center(x, position, O))
    ref = jax.block_until_ready(move_to_center_ref(x, position, O))

    assert out.shape == (B * O, C, H, W)
    assert jnp.allclose(out, ref, atol=1e-5, rtol=1e-5), \
        f"max err {jnp.max(jnp.abs(out - ref))}"

    print("KERNEL_OK")
</pallas_src>

<mosaic_0001>
module attributes {stable_mosaic.version = 11 : i64} {
  func.func @_move_to_center_kernel(%arg0: i32, %arg1: memref<8x128xf32, #tpu.memory_space<vmem>>, %arg2: memref<16x128xf32, #tpu.memory_space<vmem>>, %arg3: memref<16x128xf32, #tpu.memory_space<vmem>>) attributes {dimension_semantics = [#tpu.dimension_semantics<arbitrary>], iteration_bounds = array<i64: 1>, scalar_prefetch = 0 : i64, scratch_operands = 0 : i64, tpu.core_type = #tpu.core_type<tc>, window_params = [{pipeline_mode = #tpu.pipeline_mode<synchronous>, transform_indices = @transform_0, window_bounds = array<i64: 8, 128>}, {pipeline_mode = #tpu.pipeline_mode<synchronous>, transform_indices = @transform_1, window_bounds = array<i64: 16, 128>}, {pipeline_mode = #tpu.pipeline_mode<synchronous>, transform_indices = @transform_2, window_bounds = array<i64: 16, 128>}]} {
    %c0 = arith.constant 0 : index
    %c0_0 = arith.constant 0 : index
    %0 = vector.load %arg1[%c0, %c0_0] : memref<8x128xf32, #tpu.memory_space<vmem>>, vector<1x128xf32>
    %1 = arith.fptosi %0 : vector<1x128xf32> to vector<1x128xi32>
    %c1 = arith.constant 1 : index
    %c0_1 = arith.constant 0 : index
    %2 = vector.load %arg1[%c1, %c0_1] : memref<8x128xf32, #tpu.memory_space<vmem>>, vector<1x128xf32>
    %c2 = arith.constant 2 : index
    %c0_2 = arith.constant 0 : index
    %3 = vector.load %arg1[%c2, %c0_2] : memref<8x128xf32, #tpu.memory_space<vmem>>, vector<1x128xf32>
    %4 = arith.fptosi %3 : vector<1x128xf32> to vector<1x128xi32>
    %c3 = arith.constant 3 : index
    %c0_3 = arith.constant 0 : index
    %5 = vector.load %arg1[%c3, %c0_3] : memref<8x128xf32, #tpu.memory_space<vmem>>, vector<1x128xf32>
    %c4 = arith.constant 4 : index
    %c0_4 = arith.constant 0 : index
    %6 = vector.load %arg1[%c4, %c0_4] : memref<8x128xf32, #tpu.memory_space<vmem>>, vector<1x128xf32>
    %7 = arith.fptosi %6 : vector<1x128xf32> to vector<1x128xi32>
    %c0_5 = arith.constant 0 : index
    %c0_6 = arith.constant 0 : index
    %8 = vector.load %arg2[%c0_5, %c0_6] : memref<16x128xf32, #tpu.memory_space<vmem>>, vector<16x128xf32>
    %9 = tpu.iota {dimensions = array<i32: 0>} : vector<16x128xi32>
    %10 = vector.shape_cast %1 : vector<1x128xi32> to vector<1x128xi32>
    %11 = vector.broadcast %10 : vector<1x128xi32> to vector<16x128xi32>
    %12 = arith.addi %9, %11 : vector<16x128xi32>
    %13 = vector.shape_cast %2 : vector<1x128xf32> to vector<1x128xf32>
    %14 = vector.broadcast %13 : vector<1x128xf32> to vector<16x128xf32>
    %cst = arith.constant 1.000000e+00 : f32
    %15 = vector.broadcast %cst : f32 to vector<16x128xf32>
    %16 = arith.subf %15, %14 : vector<16x128xf32>
    %cst_7 = arith.constant 0.000000e+00 : f32
    %17 = vector.broadcast %cst_7 : f32 to vector<16x128xf32>
    %c0_i32 = arith.constant 0 : i32
    %18 = vector.broadcast %c0_i32 : i32 to vector<16x128xi32>
    %19 = arith.cmpi eq, %12, %18 : vector<16x128xi32>
    %c-1_i32 = arith.constant -1 : i32
    %20 = vector.broadcast %c-1_i32 : i32 to vector<16x128xi32>
    %21 = arith.cmpi eq, %12, %20 : vector<16x128xi32>
    %cst_8 = arith.constant 0.000000e+00 : f32
    %22 = vector.broadcast %cst_8 : f32 to vector<16x128xf32>
    %23 = arith.select %21, %14, %22 : vector<16x128xi1>, vector<16x128xf32>
    %24 = arith.select %19, %16, %23 : vector<16x128xi1>, vector<16x128xf32>
    %25 = vector.extract_strided_slice %8 {offsets = [0, 0], sizes = [1, 128], strides = [1, 1]} : vector<16x128xf32> to vector<1x128xf32>
    %26 = vector.broadcast %25 : vector<1x128xf32> to vector<16x128xf32>
    %27 = arith.mulf %24, %26 : vector<16x128xf32>
    %28 = arith.addf %17, %27 : vector<16x128xf32>
    %c1_i32 = arith.constant 1 : i32
    %29 = vector.broadcast %c1_i32 : i32 to vector<16x128xi32>
    %30 = arith.cmpi eq, %12, %29 : vector<16x128xi32>
    %c0_i32_9 = arith.constant 0 : i32
    %31 = vector.broadcast %c0_i32_9 : i32 to vector<16x128xi32>
    %32 = arith.cmpi eq, %12, %31 : vector<16x128xi32>
    %cst_10 = arith.constant 0.000000e+00 : f32
    %33 = vector.broadcast %cst_10 : f32 to vector<16x128xf32>
    %34 = arith.select %32, %14, %33 : vector<16x128xi1>, vector<16x128xf32>
    %35 = arith.select %30, %16, %34 : vector<16x128xi1>, vector<16x128xf32>
    %36 = vector.extract_strided_slice %8 {offsets = [1, 0], sizes = [1, 128], strides = [1, 1]} : vector<16x128xf32> to vector<1x128xf32>
    %37 = vector.broadcast %36 : vector<1x128xf32> to vector<16x128xf32>
    %38 = arith.mulf %35, %37 : vector<16x128xf32>
    %39 = arith.addf %28, %38 : vector<16x128xf32>
    %c2_i32 = arith.constant 2 : i32
    %40 = vector.broadcast %c2_i32 : i32 to vector<16x128xi32>
    %41 = arith.cmpi eq, %12, %40 : vector<16x128xi32>
    %c1_i32_11 = arith.constant 1 : i32
    %42 = vector.broadcast %c1_i32_11 : i32 to vector<16x128xi32>
    %43 = arith.cmpi eq, %12, %42 : vector<16x128xi32>
    %cst_12 = arith.constant 0.000000e+00 : f32
    %44 = vector.broadcast %cst_12 : f32 to vector<16x128xf32>
    %45 = arith.select %43, %14, %44 : vector<16x128xi1>, vector<16x128xf32>
    %46 = arith.select %41, %16, %45 : vector<16x128xi1>, vector<16x128xf32>
    %47 = vector.extract_strided_slice %8 {offsets = [2, 0], sizes = [1, 128], strides = [1, 1]} : vector<16x128xf32> to vector<1x128xf32>
    %48 = vector.broadcast %47 : vector<1x128xf32> to vector<16x128xf32>
    %49 = arith.mulf %46, %48 : vector<16x128xf32>
    %50 = arith.addf %39, %49 : vector<16x128xf32>
    %c3_i32 = arith.constant 3 : i32
    %51 = vector.broadcast %c3_i32 : i32 to vector<16x128xi32>
    %52 = arith.cmpi eq, %12, %51 : vector<16x128xi32>
    %c2_i32_13 = arith.constant 2 : i32
    %53 = vector.broadcast %c2_i32_13 : i32 to vector<16x128xi32>
    %54 = arith.cmpi eq, %12, %53 : vector<16x128xi32>
    %cst_14 = arith.constant 0.000000e+00 : f32
    %55 = vector.broadcast %cst_14 : f32 to vector<16x128xf32>
    %56 = arith.select %54, %14, %55 : vector<16x128xi1>, vector<16x128xf32>
    %57 = arith.select %52, %16, %56 : vector<16x128xi1>, vector<16x128xf32>
    %58 = vector.extract_strided_slice %8 {offsets = [3, 0], sizes = [1, 128], strides = [1, 1]} : vector<16x128xf32> to vector<1x128xf32>
    %59 = vector.broadcast %58 : vector<1x128xf32> to vector<16x128xf32>
    %60 = arith.mulf %57, %59 : vector<16x128xf32>
    %61 = arith.addf %50, %60 : vector<16x128xf32>
    %c4_i32 = arith.constant 4 : i32
    %62 = vector.broadcast %c4_i32 : i32 to vector<16x128xi32>
    %63 = arith.cmpi eq, %12, %62 : vector<16x128xi32>
    %c3_i32_15 = arith.constant 3 : i32
    %64 = vector.broadcast %c3_i32_15 : i32 to vector<16x128xi32>
    %65 = arith.cmpi eq, %12, %64 : vector<16x128xi32>
    %cst_16 = arith.constant 0.000000e+00 : f32
    %66 = vector.broadcast %cst_16 : f32 to vector<16x128xf32>
    %67 = arith.select %65, %14, %66 : vector<16x128xi1>, vector<16x128xf32>
    %68 = arith.select %63, %16, %67 : vector<16x128xi1>, vector<16x128xf32>
    %69 = vector.extract_strided_slice %8 {offsets = [4, 0], sizes = [1, 128], strides = [1, 1]} : vector<16x128xf32> to vector<1x128xf32>
    %70 = vector.broadcast %69 : vector<1x128xf32> to vector<16x128xf32>
    %71 = arith.mulf %68, %70 : vector<16x128xf32>
    %72 = arith.addf %61, %71 : vector<16x128xf32>
    %c5_i32 = arith.constant 5 : i32
    %73 = vector.broadcast %c5_i32 : i32 to vector<16x128xi32>
    %74 = arith.cmpi eq, %12, %73 : vector<16x128xi32>
    %c4_i32_17 = arith.constant 4 : i32
    %75 = vector.broadcast %c4_i32_17 : i32 to vector<16x128xi32>
    %76 = arith.cmpi eq, %12, %75 : vector<16x128xi32>
    %cst_18 = arith.constant 0.000000e+00 : f32
    %77 = vector.broadcast %cst_18 : f32 to vector<16x128xf32>
    %78 = arith.select %76, %14, %77 : vector<16x128xi1>, vector<16x128xf32>
    %79 = arith.select %74, %16, %78 : vector<16x128xi1>, vector<16x128xf32>
    %80 = vector.extract_strided_slice %8 {offsets = [5, 0], sizes = [1, 128], strides = [1, 1]} : vector<16x128xf32> to vector<1x128xf32>
    %81 = vector.broadcast %80 : vector<1x128xf32> to vector<16x128xf32>
    %82 = arith.mulf %79, %81 : vector<16x128xf32>
    %83 = arith.addf %72, %82 : vector<16x128xf32>
    %c6_i32 = arith.constant 6 : i32
    %84 = vector.broadcast %c6_i32 : i32 to vector<16x128xi32>
    %85 = arith.cmpi eq, %12, %84 : vector<16x128xi32>
    %c5_i32_19 = arith.constant 5 : i32
    %86 = vector.broadcast %c5_i32_19 : i32 to vector<16x128xi32>
    %87 = arith.cmpi eq, %12, %86 : vector<16x128xi32>
    %cst_20 = arith.constant 0.000000e+00 : f32
    %88 = vector.broadcast %cst_20 : f32 to vector<16x128xf32>
    %89 = arith.select %87, %14, %88 : vector<16x128xi1>, vector<16x128xf32>
    %90 = arith.select %85, %16, %89 : vector<16x128xi1>, vector<16x128xf32>
    %91 = vector.extract_strided_slice %8 {offsets = [6, 0], sizes = [1, 128], strides = [1, 1]} : vector<16x128xf32> to vector<1x128xf32>
    %92 = vector.broadcast %91 : vector<1x128xf32> to vector<16x128xf32>
    %93 = arith.mulf %90, %92 : vector<16x128xf32>
    %94 = arith.addf %83, %93 : vector<16x128xf32>
    %c7_i32 = arith.constant 7 : i32
    %95 = vector.broadcast %c7_i32 : i32 to vector<16x128xi32>
    %96 = arith.cmpi eq, %12, %95 : vector<16x128xi32>
    %c6_i32_21 = arith.constant 6 : i32
    %97 = vector.broadcast %c6_i32_21 : i32 to vector<16x128xi32>
    %98 = arith.cmpi eq, %12, %97 : vector<16x128xi32>
    %cst_22 = arith.constant 0.000000e+00 : f32
    %99 = vector.broadcast %cst_22 : f32 to vector<16x128xf32>
    %100 = arith.select %98, %14, %99 : vector<16x128xi1>, vector<16x128xf32>
    %101 = arith.select %96, %16, %100 : vector<16x128xi1>, vector<16x128xf32>
    %102 = vector.extract_strided_slice %8 {offsets = [7, 0], sizes = [1, 128], strides = [1, 1]} : vector<16x128xf32> to vector<1x128xf32>
    %103 = vector.broadcast %102 : vector<1x128xf32> to vector<16x128xf32>
    %104 = arith.mulf %101, %103 : vector<16x128xf32>
    %105 = arith.addf %94, %104 : vector<16x128xf32>
    %c8_i32 = arith.constant 8 : i32
    %106 = vector.broadcast %c8_i32 : i32 to vector<16x128xi32>
    %107 = arith.cmpi eq, %12, %106 : vector<16x128xi32>
    %c7_i32_23 = arith.constant 7 : i32
    %108 = vector.broadcast %c7_i32_23 : i32 to vector<16x128xi32>
    %109 = arith.cmpi eq, %12, %108 : vector<16x128xi32>
    %cst_24 = arith.constant 0.000000e+00 : f32
    %110 = vector.broadcast %cst_24 : f32 to vector<16x128xf32>
    %111 = arith.select %109, %14, %110 : vector<16x128xi1>, vector<16x128xf32>
    %112 = arith.select %107, %16, %111 : vector<16x128xi1>, vector<16x128xf32>
    %113 = vector.extract_strided_slice %8 {offsets = [8, 0], sizes = [1, 128], strides = [1, 1]} : vector<16x128xf32> to vector<1x128xf32>
    %114 = vector.broadcast %113 : vector<1x128xf32> to vector<16x128xf32>
    %115 = arith.mulf %112, %114 : vector<16x128xf32>
    %116 = arith.addf %105, %115 : vector<16x128xf32>
    %c9_i32 = arith.constant 9 : i32
    %117 = vector.broadcast %c9_i32 : i32 to vector<16x128xi32>
    %118 = arith.cmpi eq, %12, %117 : vector<16x128xi32>
    %c8_i32_25 = arith.constant 8 : i32
    %119 = vector.broadcast %c8_i32_25 : i32 to vector<16x128xi32>
    %120 = arith.cmpi eq, %12, %119 : vector<16x128xi32>
    %cst_26 = arith.constant 0.000000e+00 : f32
    %121 = vector.broadcast %cst_26 : f32 to vector<16x128xf32>
    %122 = arith.select %120, %14, %121 : vector<16x128xi1>, vector<16x128xf32>
    %123 = arith.select %118, %16, %122 : vector<16x128xi1>, vector<16x128xf32>
    %124 = vector.extract_strided_slice %8 {offsets = [9, 0], sizes = [1, 128], strides = [1, 1]} : vector<16x128xf32> to vector<1x128xf32>
    %125 = vector.broadcast %124 : vector<1x128xf32> to vector<16x128xf32>
    %126 = arith.mulf %123, %125 : vector<16x128xf32>
    %127 = arith.addf %116, %126 : vector<16x128xf32>
    %c10_i32 = arith.constant 10 : i32
    %128 = vector.broadcast %c10_i32 : i32 to vector<16x128xi32>
    %129 = arith.cmpi eq, %12, %128 : vector<16x128xi32>
    %c9_i32_27 = arith.constant 9 : i32
    %130 = vector.broadcast %c9_i32_27 : i32 to vector<16x128xi32>
    %131 = arith.cmpi eq, %12, %130 : vector<16x128xi32>
    %cst_28 = arith.constant 0.000000e+00 : f32
    %132 = vector.broadcast %cst_28 : f32 to vector<16x128xf32>
    %133 = arith.select %131, %14, %132 : vector<16x128xi1>, vector<16x128xf32>
    %134 = arith.select %129, %16, %133 : vector<16x128xi1>, vector<16x128xf32>
    %135 = vector.extract_strided_slice %8 {offsets = [10, 0], sizes = [1, 128], strides = [1, 1]} : vector<16x128xf32> to vector<1x128xf32>
    %136 = vector.broadcast %135 : vector<1x128xf32> to vector<16x128xf32>
    %137 = arith.mulf %134, %136 : vector<16x128xf32>
    %138 = arith.addf %127, %137 : vector<16x128xf32>
    %c11_i32 = arith.constant 11 : i32
    %139 = vector.broadcast %c11_i32 : i32 to vector<16x128xi32>
    %140 = arith.cmpi eq, %12, %139 : vector<16x128xi32>
    %c10_i32_29 = arith.constant 10 : i32
    %141 = vector.broadcast %c10_i32_29 : i32 to vector<16x128xi32>
    %142 = arith.cmpi eq, %12, %141 : vector<16x128xi32>
    %cst_30 = arith.constant 0.000000e+00 : f32
    %143 = vector.broadcast %cst_30 : f32 to vector<16x128xf32>
    %144 = arith.select %142, %14, %143 : vector<16x128xi1>, vector<16x128xf32>
    %145 = arith.select %140, %16, %144 : vector<16x128xi1>, vector<16x128xf32>
    %146 = vector.extract_strided_slice %8 {offsets = [11, 0], sizes = [1, 128], strides = [1, 1]} : vector<16x128xf32> to vector<1x128xf32>
    %147 = vector.broadcast %146 : vector<1x128xf32> to vector<16x128xf32>
    %148 = arith.mulf %145, %147 : vector<16x128xf32>
    %149 = arith.addf %138, %148 : vector<16x128xf32>
    %c12_i32 = arith.constant 12 : i32
    %150 = vector.broadcast %c12_i32 : i32 to vector<16x128xi32>
    %151 = arith.cmpi eq, %12, %150 : vector<16x128xi32>
    %c11_i32_31 = arith.constant 11 : i32
    %152 = vector.broadcast %c11_i32_31 : i32 to vector<16x128xi32>
    %153 = arith.cmpi eq, %12, %152 : vector<16x128xi32>
    %cst_32 = arith.constant 0.000000e+00 : f32
    %154 = vector.broadcast %cst_32 : f32 to vector<16x128xf32>
    %155 = arith.select %153, %14, %154 : vector<16x128xi1>, vector<16x128xf32>
    %156 = arith.select %151, %16, %155 : vector<16x128xi1>, vector<16x128xf32>
    %157 = vector.extract_strided_slice %8 {offsets = [12, 0], sizes = [1, 128], strides = [1, 1]} : vector<16x128xf32> to vector<1x128xf32>
    %158 = vector.broadcast %157 : vector<1x128xf32> to vector<16x128xf32>
    %159 = arith.mulf %156, %158 : vector<16x128xf32>
    %160 = arith.addf %149, %159 : vector<16x128xf32>
    %c13_i32 = arith.constant 13 : i32
    %161 = vector.broadcast %c13_i32 : i32 to vector<16x128xi32>
    %162 = arith.cmpi eq, %12, %161 : vector<16x128xi32>
    %c12_i32_33 = arith.constant 12 : i32
    %163 = vector.broadcast %c12_i32_33 : i32 to vector<16x128xi32>
    %164 = arith.cmpi eq, %12, %163 : vector<16x128xi32>
    %cst_34 = arith.constant 0.000000e+00 : f32
    %165 = vector.broadcast %cst_34 : f32 to vector<16x128xf32>
    %166 = arith.select %164, %14, %165 : vector<16x128xi1>, vector<16x128xf32>
    %167 = arith.select %162, %16, %166 : vector<16x128xi1>, vector<16x128xf32>
    %168 = vector.extract_strided_slice %8 {offsets = [13, 0], sizes = [1, 128], strides = [1, 1]} : vector<16x128xf32> to vector<1x128xf32>
    %169 = vector.broadcast %168 : vector<1x128xf32> to vector<16x128xf32>
    %170 = arith.mulf %167, %169 : vector<16x128xf32>
    %171 = arith.addf %160, %170 : vector<16x128xf32>
    %c14_i32 = arith.constant 14 : i32
    %172 = vector.broadcast %c14_i32 : i32 to vector<16x128xi32>
    %173 = arith.cmpi eq, %12, %172 : vector<16x128xi32>
    %c13_i32_35 = arith.constant 13 : i32
    %174 = vector.broadcast %c13_i32_35 : i32 to vector<16x128xi32>
    %175 = arith.cmpi eq, %12, %174 : vector<16x128xi32>
    %cst_36 = arith.constant 0.000000e+00 : f32
    %176 = vector.broadcast %cst_36 : f32 to vector<16x128xf32>
    %177 = arith.select %175, %14, %176 : vector<16x128xi1>, vector<16x128xf32>
    %178 = arith.select %173, %16, %177 : vector<16x128xi1>, vector<16x128xf32>
    %179 = vector.extract_strided_slice %8 {offsets = [14, 0], sizes = [1, 128], strides = [1, 1]} : vector<16x128xf32> to vector<1x128xf32>
    %180 = vector.broadcast %179 : vector<1x128xf32> to vector<16x128xf32>
    %181 = arith.mulf %178, %180 : vector<16x128xf32>
    %182 = arith.addf %171, %181 : vector<16x128xf32>
    %c15_i32 = arith.constant 15 : i32
    %183 = vector.broadcast %c15_i32 : i32 to vector<16x128xi32>
    %184 = arith.cmpi eq, %12, %183 : vector<16x128xi32>
    %c14_i32_37 = arith.constant 14 : i32
    %185 = vector.broadcast %c14_i32_37 : i32 to vector<16x128xi32>
    %186 = arith.cmpi eq, %12, %185 : vector<16x128xi32>
    %cst_38 = arith.constant 0.000000e+00 : f32
    %187 = vector.broadcast %cst_38 : f32 to vector<16x128xf32>
    %188 = arith.select %186, %14, %187 : vector<16x128xi1>, vector<16x128xf32>
    %189 = arith.select %184, %16, %188 : vector<16x128xi1>, vector<16x128xf32>
    %190 = vector.extract_strided_slice %8 {offsets = [15, 0], sizes = [1, 128], strides = [1, 1]} : vector<16x128xf32> to vector<1x128xf32>
    %191 = vector.broadcast %190 : vector<1x128xf32> to vector<16x128xf32>
    %192 = arith.mulf %189, %191 : vector<16x128xf32>
    %193 = arith.addf %182, %192 : vector<16x128xf32>
    %194 = tpu.iota {dimensions = array<i32: 0>} : vector<128x128xi32>
    %195 = tpu.iota {dimensions = array<i32: 1>} : vector<128x128xi32>
    %196 = arith.subi %194, %195 : vector<128x128xi32>
    %197 = arith.addi %7, %4 : vector<1x128xi32>
    %c1_i32_39 = arith.constant 1 : i32
    %198 = vector.broadcast %c1_i32_39 : i32 to vector<1x128xi32>
    %199 = arith.addi %197, %198 : vector<1x128xi32>
    %c0_i32_40 = arith.constant 0 : i32
    %200 = vector.broadcast %c0_i32_40 : i32 to vector<1x128xi32>
    %201 = arith.cmpi sge, %197, %200 : vector<1x128xi32>
    %c16_i32 = arith.constant 16 : i32
    %202 = vector.broadcast %c16_i32 : i32 to vector<1x128xi32>
    %203 = arith.cmpi slt, %197, %202 : vector<1x128xi32>
    %204 = arith.andi %201, %203 : vector<1x128xi1>
    %c0_i32_41 = arith.constant 0 : i32
    %205 = vector.broadcast %c0_i32_41 : i32 to vector<1x128xi32>
    %206 = arith.cmpi sge, %199, %205 : vector<1x128xi32>
    %c16_i32_42 = arith.constant 16 : i32
    %207 = vector.broadcast %c16_i32_42 : i32 to vector<1x128xi32>
    %208 = arith.cmpi slt, %199, %207 : vector<1x128xi32>
    %209 = arith.andi %206, %208 : vector<1x128xi1>
    %cst_43 = arith.constant 1.000000e+00 : f32
    %210 = vector.broadcast %cst_43 : f32 to vector<1x128xf32>
    %211 = arith.subf %210, %5 : vector<1x128xf32>
    %212 = vector.shape_cast %211 : vector<1x128xf32> to vector<1x128xf32>
    %213 = vector.broadcast %212 : vector<1x128xf32> to vector<128x128xf32>
    %214 = vector.shape_cast %5 : vector<1x128xf32> to vector<1x128xf32>
    %215 = vector.broadcast %214 : vector<1x128xf32> to vector<128x128xf32>
    %216 = vector.broadcast %4 : vector<1x128xi32> to vector<128x128xi32>
    %217 = arith.cmpi eq, %196, %216 : vector<128x128xi32>
    %218 = vector.broadcast %204 : vector<1x128xi1> to vector<128x128xi1>
    %219 = arith.andi %217, %218 : vector<128x128xi1>
    %c1_i32_44 = arith.constant 1 : i32
    %220 = vector.broadcast %c1_i32_44 : i32 to vector<1x128xi32>
    %221 = arith.addi %4, %220 : vector<1x128xi32>
    %222 = vector.broadcast %221 : vector<1x128xi32> to vector<128x128xi32>
    %223 = arith.cmpi eq, %196, %222 : vector<128x128xi32>
    %224 = vector.broadcast %209 : vector<1x128xi1> to vector<128x128xi1>
    %225 = arith.andi %223, %224 : vector<128x128xi1>
    %cst_45 = arith.constant 0.000000e+00 : f32
    %226 = vector.broadcast %cst_45 : f32 to vector<128x128xf32>
    %227 = arith.select %225, %215, %226 : vector<128x128xi1>, vector<128x128xf32>
    %228 = arith.select %219, %213, %227 : vector<128x128xi1>, vector<128x128xf32>
    %cst_46 = arith.constant dense<0.000000e+00> : vector<16x128xf32>
    %229 = tpu.matmul %193, %228, %cst_46 {dimension_numbers = #tpu.dot_dimension_numbers<[1], [0], [0], [1], [0, 0, 1, 1], [], []>} : vector<16x128xf32>, vector<128x128xf32>, vector<16x128xf32> -> vector<16x128xf32>
    %c0_47 = arith.constant 0 : index
    %c0_48 = arith.constant 0 : index
    %230 = vector.load %arg3[%c0_47, %c0_48] : memref<16x128xf32, #tpu.memory_space<vmem>>, vector<16x128xf32>
    tpu.vector_store %arg3[%c0_47, %c0_48], %229 {strides = array<i32>} : memref<16x128xf32, #tpu.memory_space<vmem>>, vector<16x128xf32>,
    return
  }
  func.func @transform_0(%arg0: i32) -> (i32, i32) {
    %c0_i32 = arith.constant 0 : i32
    %c0_i32_0 = arith.constant 0 : i32
    %c0_i32_1 = arith.constant 0 : i32
    return %c0_i32, %c0_i32_0 : i32, i32
  }
  func.func @transform_1(%arg0: i32) -> (i32, i32) {
    %c0_i32 = arith.constant 0 : i32
    %c0_i32_0 = arith.constant 0 : i32
    %c0_i32_1 = arith.constant 0 : i32
    return %c0_i32, %c0_i32_0 : i32, i32
  }
  func.func @transform_2(%arg0: i32) -> (i32, i32) {
    %c0_i32 = arith.constant 0 : i32
    %c0_i32_0 = arith.constant 0 : i32
    %c0_i32_1 = arith.constant 0 : i32
    return %c0_i32, %c0_i32_0 : i32, i32
  }
}

</mosaic_0001>

<bundles_post_ra>
// kernel: tpu_custom_call.1
= control target key start
LH: loop header
LB: loop body
LE: loop exit
PB: predicated region body
PF: predicated region fallthrough
CT: control target
= control target key end

     0   :  { %7 = vsyncpa [#allocation3], 0  ;;  %s1231_s0 = inlined_call_operand.hbm [shape: f32[8,128], index: 0, kind: input, shape index: {}]   ;;  %s1232_s1 = inlined_call_operand.hbm [shape: f32[16,128], index: 1, kind: input, shape index: {}]   ;;  %s1233_s2 = inlined_call_operand.hbm [shape: f32[16,128], index: 2, kind: output, shape index: {}]  }
   0x1   :  { %8 = vsyncpa [#allocation6], 0 }
   0x2   :  { %9 = vsyncpa [#allocation4], 0  ;;  %s15_s11 = sshll.u32 %s1231_s0, 4  ;;  %s548_s12 = smov [#allocation2]   ;;  %s16_s11 = int_to_ptr.hbm [resolvable:$true] %s15_s11 }
   0x3   :  { %s17_s13 = sshll.u32 %s548_s12, 4  ;;  %s25_s16 = sshll.u32 %s1232_s1, 4  ;;  %s18_s13 = int_to_ptr.vmem [resolvable:$true] %s17_s13  ;;  %s26_s16 = int_to_ptr.hbm [resolvable:$true] %s25_s16 }
   0x4   :  { %20 = dma.hbm_to_vmem [thread:$0]  %s16_s11, 128, %s18_s13, [#allocation3]  }
   0x5   :  { %s549_s17 = smov [#allocation5]   ;;  %s550_s19 = smov 128  }
   0x6   :  { %s27_s18 = sshll.u32 %s549_s17, 4  ;;  %s551_s20 = smov 8   ;;  %s28_s18 = int_to_ptr.vmem [resolvable:$true] %s27_s18 }
   0x7   :  { %33 = dma.hbm_to_vmem [thread:$0]  %s26_s16, 256, %s28_s18, [#allocation6], %s550_s19, %s550_s19, %s551_s20  }
   0x8   :  { %542 = dma.done.wait [#allocation3], 128  }
   0x9   :  { %543 = vsyncadd [#allocation3], 4294967168 }
   0xa   :  { %544 = dma.done.wait [#allocation6], 256  }
   0xb   :  { %545 = vsyncadd [#allocation6], 4294967040  ;;  %v52_v0 = vlaneseq  ;;  %v45_v3 = vld [vmem:[#allocation2 + $0x2] sm:$0x1]  ;;  %v48_v8 = vld [vmem:[#allocation2 + $0x4] sm:$0x1] }
   0xc   :  { %vm452_vm0 = vcmp.lt.s32.totalorder %v45_v3, 0  ;;  %v453_v6 = vceil.f32 %v45_v3  ;;  %v454_v7 = vfloor.f32 %v45_v3  ;;  %vm457_vm1 = vcmp.lt.s32.totalorder %v48_v8, 0  ;;  %v47_v17 = vld [vmem:[#allocation2 + $0x3] sm:$0x1]  ;;  %v42_v48 = vld [vmem:[#allocation2] sm:$0x1] }
   0xd   :  { %v578_v1 = vshrl.u32 %v52_v0, 7  ;;  %v580_v2 = vand.u32 127, %v52_v0  ;;  %v458_v10 = vceil.f32 %v48_v8  ;;  %v459_v11 = vfloor.f32 %v48_v8  ;;  %v636_v52 = vld [vmem:[#allocation2 + $0x3] ss:$0 sm:$0xff]  ;;  %v671_v60 = vld [vmem:[#allocation2 + $0x1] ss:$0 sm:$0xff] }
   0xe   :  { %v455_v13 = vsel %vm452_vm0, %v453_v6, %v454_v7  ;;  %v278_v29 = vsub.f32 1.0, %v47_v17  ;;  %v552_v43 = vmov 0   ;;  %vm447_vm15 = vcmp.lt.s32.totalorder %v42_v48, 0  ;;  %s553_s0 = smov [#allocation7]   ;;  %s417_s23 = sshll.u32 %s1233_s2, 4  ;;  %s418_s23 = int_to_ptr.hbm [resolvable:$true] %s417_s23 }
   0xf   :  { %v251_v4 = vadd.s32 120, %v578_v1  ;;  %v250_v5 = vadd.s32 112, %v578_v1  ;;  %v249_v9 = vadd.s32 104, %v578_v1  ;;  %v248_v12 = vadd.s32 96, %v578_v1  ;;  %s415_s1 = sshll.u32 %s553_s0, 4  ;;  %s416_s1 = int_to_ptr.vmem [resolvable:$true] %s415_s1 }
  0x10   :  { %v247_v14 = vadd.s32 88, %v578_v1  ;;  %v246_v15 = vadd.s32 80, %v578_v1  ;;  %v456_v16 = vcvt.f32.s32 %v455_v13  ;;  %v460_v18 = vsel %vm457_vm1, %v458_v10, %v459_v11 }
  0x11   :  { %v245_v19 = vadd.s32 72, %v578_v1  ;;  %v461_v20 = vcvt.f32.s32 %v460_v18  ;;  %v269_v21 = vsub.s32 %v251_v4, %v580_v2  ;;  %v268_v22 = vsub.s32 %v250_v5, %v580_v2  ;;  %v709_v4 = vld [vmem:[#allocation5] sm:$0xff] }
  0x12   :  { %v244_v23 = vadd.s32 64, %v578_v1  ;;  %v317_v24 = vadd.s32 1, %v456_v16  ;;  %v593_v25 = vsub.s32 %v249_v9, %v580_v2  ;;  %v596_v26 = vsub.s32 %v248_v12, %v580_v2 }
  0x13   :  { %v243_v27 = vadd.s32 56, %v578_v1  ;;  %v270_v28 = vadd.s32 %v461_v20, %v456_v16  ;;  %v600_v30 = vsub.s32 %v247_v14, %v580_v2  ;;  %v603_v31 = vsub.s32 %v246_v15, %v580_v2  ;;  %v772_v20 = vld [vmem:[#allocation5 + $0x8] sm:$0xff] }
  0x14   :  { %v605_v32 = vperm.slane %v456_v16, 0  ;;  %v608_v33 = vsub.s32 %v245_v19, %v580_v2  ;;  %v242_v34 = vadd.s32 48, %v578_v1  ;;  %v241_v35 = vadd.s32 40, %v578_v1 }
  0x15   :  { %v271_v36 = vadd.s32 1, %v270_v28  ;;  %vm272_vm2 = vcmp.ge.s32.totalorder %v270_v28, 0  ;;  %vm273_vm3 = vcmp.lt.s32.totalorder %v270_v28, 16  ;;  %v240_v37 = vadd.s32 32, %v578_v1 }
  0x16   :  { %vm274_vm4 = vmand %vm272_vm2, %vm273_vm3  ;;  %v613_v38 = vperm.slane %v317_v24, 0  ;;  %v616_v39 = vsub.s32 %v244_v23, %v580_v2  ;;  %v619_v40 = vsub.s32 %v243_v27, %v580_v2  ;;  %v239_v41 = vadd.s32 24, %v578_v1 }
  0x17   :  { %vm275_vm5 = vcmp.ge.s32.totalorder %v271_v36, 0  ;;  %vm276_vm6 = vcmp.lt.s32.totalorder %v271_v36, 16  ;;  %v622_v42 = vperm.slane %v278_v29, 0  ;;  %v298_v44 = vsel %vm274_vm4, 1, %v552_v43 }
  0x18   :  { %vm277_vm7 = vmand %vm275_vm5, %vm276_vm6  ;;  %vm297_vm8 = vcmp.eq.s32.totalorder %v269_v21, %v605_v32  ;;  %v299_v45 = vperm.slane %v298_v44, 0  ;;  %v626_v46 = vsub.s32 %v242_v34, %v580_v2  ;;  %v629_v47 = vsub.s32 %v241_v35, %v580_v2 }
  0x19   :  { %v335_v49 = vsel %vm277_vm7, 1, %v552_v43  ;;  %vm296_vm9 = vcmp.eq.s32.totalorder %v268_v22, %v605_v32  ;;  %v633_v50 = vsub.s32 %v240_v37, %v580_v2  ;;  %v238_v51 = vadd.s32 16, %v578_v1 }
  0x1a   :  { %vm638_vm10 = vcmp.eq.s32.totalorder %v299_v45, 1  ;;  %vm334_vm11 = vcmp.eq.s32.totalorder %v269_v21, %v613_v38  ;;  %v336_v54 = vperm.slane %v335_v49, 0  ;;  %v644_v55 = vsub.s32 %v239_v41, %v580_v2 }
  0x1b   :  { %vm648_vm12 = vmand %vm297_vm8, %vm638_vm10  ;;  %vm333_vm13 = vcmp.eq.s32.totalorder %v268_v22, %v613_v38  ;;  %vm295_vm14 = vcmp.eq.s32.totalorder %v593_v25, %v605_v32  ;;  %v448_v57 = vceil.f32 %v42_v48  ;;  %vm332_vm2 = vcmp.eq.s32.totalorder %v593_v25, %v613_v38 }
  0x1c   :  { %vm655_vm0 = vcmp.eq.s32.totalorder %v336_v54, 1  ;;  %vm661_vm1 = vmand %vm296_vm9, %vm638_vm10  ;;  %vm294_vm3 = vcmp.eq.s32.totalorder %v596_v26, %v605_v32  ;;  %vm331_vm4 = vcmp.eq.s32.totalorder %v596_v26, %v613_v38  ;;  %vm292_vm8 = vcmp.eq.s32.totalorder %v603_v31, %v605_v32 }
  0x1d   :  { %vm353_vm5 = vmand %vm334_vm11, %vm655_vm0  ;;  %v449_v61 = vfloor.f32 %v42_v48  ;;  %vm329_vm11 = vcmp.eq.s32.totalorder %v603_v31, %v613_v38  ;;  %vm291_vm6 = vcmp.eq.s32.totalorder %v608_v33, %v605_v32  ;;  %vm327_vm7 = vcmp.eq.s32.totalorder %v616_v39, %v613_v38 }
  0x1e   :  { %v369_v62 = vsel %vm353_vm5, %v636_v52, 0.0  ;;  %vm352_vm9 = vmand %vm333_vm13, %vm655_vm0  ;;  %vm290_vm5 = vcmp.eq.s32.totalorder %v616_v39, %v605_v32  ;;  %v722_v6 = vsub.s32 %v238_v51, %v580_v2  ;;  %v54_v8 = vadd.s32 8, %v578_v1 }
  0x1f   :  { %v385_v63 = vsel %vm648_vm12, %v622_v42, %v369_v62  ;;  %v368_v0 = vsel %vm352_vm9, %v636_v52, 0.0  ;;  %vm701_vm13 = vmand %vm295_vm14, %vm638_vm10  ;;  %vm289_vm14 = vcmp.eq.s32.totalorder %v619_v40, %v605_v32  ;;  %v450_v7 = vsel %vm447_vm15, %v448_v57, %v449_v61 }
  0x20   :  { %386 = vmatpush.msra.mxu0 %v385_v63  ;;  %431 = vmatpush.msra.mxu1 %v385_v63  ;;  %v384_v5 = vsel %vm661_vm1, %v622_v42, %v368_v0  ;;  %vm351_vm12 = vmand %vm332_vm2, %vm655_vm0  ;;  %vm326_vm2 = vcmp.eq.s32.totalorder %v619_v40, %v613_v38  ;;  %v451_v11 = vcvt.f32.s32 %v450_v7  ;;  %v740_v12 = vsub.s32 %v578_v1, %v580_v2 }
  0x21   :  { %v367_v9 = vsel %vm351_vm12, %v636_v52, 0.0  ;;  %vm732_vm1 = vmand %vm294_vm3, %vm638_vm10  ;;  %v743_v13 = vsub.f32 1.0, %v671_v60  ;;  %vm288_vm3 = vcmp.eq.s32.totalorder %v626_v46, %v605_v32  ;;  %v756_v15 = vsub.s32 %v54_v8, %v580_v2 }
  0x22   :  { %387 = vmatpush.msra.mxu0 %v384_v5  ;;  %432 = vmatpush.msra.mxu1 %v384_v5  ;;  %v383_v14 = vsel %vm701_vm13, %v622_v42, %v367_v9  ;;  %vm350_vm15 = vmand %vm331_vm4, %vm655_vm0  ;;  %v68_v16 = vperm.slane %v709_v4, 0  ;;  %v79_v17 = vperm.slane %v709_v4, 1  ;;  %vm1246_vm9 = vcmp.eq.s32.totalorder %v600_v30, %v605_v32 }
  0x23   :  { %v366_v18 = vsel %vm350_vm15, %v636_v52, 0.0  ;;  %vm766_vm13 = vmand %vm1246_vm9, %vm638_vm10  ;;  %v55_v2 = vperm.slane %v451_v11, 0  ;;  %v90_v21 = vperm.slane %v709_v4, 2  ;;  %v101_v22 = vperm.slane %v709_v4, 3 }
  0x24   :  { %388 = vmatpush.msra.mxu0 %v383_v14  ;;  %433 = vmatpush.msra.mxu1 %v383_v14  ;;  %v382_v23 = vsel %vm732_vm1, %v622_v42, %v366_v18  ;;  %vm1249_vm12 = vcmp.eq.s32.totalorder %v600_v30, %v613_v38  ;;  %v112_v24 = vperm.slane %v709_v4, 4  ;;  %v123_v25 = vperm.slane %v709_v4, 5  ;;  %vm795_vm1 = vmand %vm292_vm8, %vm638_vm10 }
  0x25   :  { %vm349_vm15 = vmand %vm1249_vm12, %vm655_vm0  ;;  %v134_v26 = vperm.slane %v709_v4, 6  ;;  %v802_v29 = vadd.s32 %v55_v2, %v578_v1  ;;  %v804_v30 = vadd.s32 %v55_v2, %v54_v8  ;;  %v145_v34 = vperm.slane %v709_v4, 7 }
  0x26   :  { %v365_v27 = vsel %vm349_vm15, %v636_v52, 0.0  ;;  %389 = vmatpush.msra.mxu0 %v382_v23  ;;  %434 = vmatpush.msra.mxu1 %v382_v23  ;;  %vm348_vm8 = vmand %vm329_vm11, %vm655_vm0  ;;  %v156_v1 = vperm.slane %v772_v20, 0  ;;  %v167_v36 = vperm.slane %v772_v20, 1  ;;  %v178_v37 = vperm.slane %v772_v20, 2 }
  0x27   :  { %v381_v35 = vsel %vm766_vm13, %v622_v42, %v365_v27  ;;  %v364_v41 = vsel %vm348_vm8, %v636_v52, 0.0  ;;  %vm826_vm13 = vmand %vm291_vm6, %vm638_vm10  ;;  %vm60_vm15 = vcmp.eq.s32.totalorder %v802_v29, 0  ;;  %vm62_vm12 = vcmp.eq.s32.totalorder %v802_v29, 4294967295 }
  0x28   :  { %vm73_vm9 = vcmp.eq.s32.totalorder %v802_v29, 1  ;;  %390 = vmatpush.msra.mxu0 %v381_v35  ;;  %435 = vmatpush.msra.mxu1 %v381_v35  ;;  %v380_v31 = vsel %vm795_vm1, %v622_v42, %v364_v41  ;;  %vm1254_vm6 = vcmp.eq.s32.totalorder %v608_v33, %v613_v38  ;;  %vm285_vm11 = vcmp.eq.s32.totalorder %v644_v55, %v605_v32  ;;  %vm854_vm1 = vmand %vm290_vm5, %vm638_vm10 }
  0x29   :  { %vm347_vm8 = vmand %vm1254_vm6, %vm655_vm0  ;;  %v64_v44 = vsel %vm62_vm12, %v671_v60, 0.0  ;;  %v75_v45 = vsel %vm60_vm15, %v671_v60, 0.0  ;;  %vm84_vm4 = vcmp.eq.s32.totalorder %v802_v29, 2  ;;  %vm322_vm6 = vcmp.eq.s32.totalorder %v644_v55, %v613_v38 }
  0x2a   :  { %v363_v48 = vsel %vm347_vm8, %v636_v52, 0.0  ;;  %v66_v33 = vsel %vm60_vm15, %v743_v13, %v64_v44  ;;  %v77_v51 = vsel %vm73_vm9, %v743_v13, %v75_v45  ;;  %v86_v54 = vsel %vm73_vm9, %v671_v60, 0.0  ;;  %391 = vmatpush.msra.mxu0 %v380_v31  ;;  %436 = vmatpush.msra.mxu1 %v380_v31  ;;  %vm346_vm5 = vmand %vm327_vm7, %vm655_vm0 }
  0x2b   :  { %v379_v56 = vsel %vm826_vm13, %v622_v42, %v363_v48  ;;  %vm284_vm12 = vcmp.eq.s32.totalorder %v722_v6, %v605_v32  ;;  %v69_v57 = vmul.f32 %v68_v16, %v66_v33  ;;  %v80_v59 = vmul.f32 %v79_v17, %v77_v51  ;;  %vm884_vm15 = vmand %vm289_vm14, %vm638_vm10 }
  0x2c   :  { %vm95_vm9 = vcmp.eq.s32.totalorder %v802_v29, 3  ;;  %v362_v61 = vsel %vm346_vm5, %v636_v52, 0.0  ;;  %vm321_vm7 = vcmp.eq.s32.totalorder %v722_v6, %v613_v38  ;;  %v88_v62 = vsel %vm84_vm4, %v743_v13, %v86_v54  ;;  %392 = vmatpush.msra.mxu0 %v379_v56  ;;  %437 = vmatpush.msra.mxu1 %v379_v56  ;;  %vm345_vm14 = vmand %vm326_vm2, %vm655_vm0 }
  0x2d   :  { %v97_v63 = vsel %vm84_vm4, %v671_v60, 0.0  ;;  %vm106_vm13 = vcmp.eq.s32.totalorder %v802_v29, 4  ;;  %v378_v0 = vsel %vm854_vm1, %v622_v42, %v362_v61  ;;  %vm283_vm8 = vcmp.eq.s32.totalorder %v756_v15, %v605_v32  ;;  %vm918_vm4 = vmand %vm288_vm3, %vm638_vm10 }
  0x2e   :  { %v82_v3 = vadd.f32 %v80_v59, %v69_v57  ;;  %v91_v5 = vmul.f32 %v90_v21, %v88_v62  ;;  %v108_v7 = vsel %vm95_vm9, %v671_v60, 0.0  ;;  %v361_v8 = vsel %vm345_vm14, %v636_v52, 0.0  ;;  %393 = vmatpush.msra.mxu0 %v378_v0  ;;  %438 = vmatpush.msra.mxu1 %v378_v0 }
  0x2f   :  { %vm320_vm2 = vcmp.eq.s32.totalorder %v756_v15, %v613_v38  ;;  %v99_v9 = vsel %vm95_vm9, %v743_v13, %v97_v63  ;;  %v110_v10 = vsel %vm106_vm13, %v743_v13, %v108_v7  ;;  %vm117_vm1 = vcmp.eq.s32.totalorder %v802_v29, 5 }
  0x30   :  { %v377_v11 = vsel %vm884_vm15, %v622_v42, %v361_v8  ;;  %vm1261_vm3 = vcmp.eq.s32.totalorder %v626_v46, %v613_v38  ;;  %vm282_vm9 = vcmp.eq.s32.totalorder %v740_v12, %v605_v32  ;;  %v93_v14 = vadd.f32 %v91_v5, %v82_v3 }
  0x31   :  { %vm344_vm5 = vmand %vm1261_vm3, %vm655_vm0  ;;  %v102_v18 = vmul.f32 %v101_v22, %v99_v9  ;;  %v119_v19 = vsel %vm106_vm13, %v671_v60, 0.0  ;;  %vm1262_vm15 = vcmp.eq.s32.totalorder %v629_v47, %v605_v32  ;;  %v113_v23 = vmul.f32 %v112_v24, %v110_v10  ;;  %394 = vmatpush.msra.mxu0 %v377_v11  ;;  %439 = vmatpush.msra.mxu1 %v377_v11 }
  0x32   :  { %v360_v2 = vsel %vm344_vm5, %v636_v52, 0.0  ;;  %vm952_vm14 = vmand %vm1262_vm15, %vm638_vm10  ;;  %v121_v27 = vsel %vm117_vm1, %v743_v13, %v119_v19  ;;  %vm128_vm13 = vcmp.eq.s32.totalorder %v802_v29, 6  ;;  %vm1265_vm5 = vcmp.eq.s32.totalorder %v629_v47, %v613_v38 }
  0x33   :  { %v376_v28 = vsel %vm918_vm4, %v622_v42, %v360_v2  ;;  %vm343_vm15 = vmand %vm1265_vm5, %vm655_vm0  ;;  %v104_v35 = vadd.f32 %v102_v18, %v93_v14  ;;  %v124_v41 = vmul.f32 %v123_v25, %v121_v27  ;;  %v130_v43 = vsel %vm117_vm1, %v671_v60, 0.0 }
  0x34   :  { %v359_v31 = vsel %vm343_vm15, %v636_v52, 0.0  ;;  %vm1266_vm4 = vcmp.eq.s32.totalorder %v633_v50, %v605_v32  ;;  %v132_v47 = vsel %vm128_vm13, %v743_v13, %v130_v43  ;;  %vm139_vm5 = vcmp.eq.s32.totalorder %v802_v29, 7  ;;  %395 = vmatpush.msra.mxu0 %v376_v28  ;;  %440 = vmatpush.msra.mxu1 %v376_v28 }
  0x35   :  { %vm983_vm3 = vmand %vm1266_vm4, %vm638_vm10  ;;  %v141_v45 = vsel %vm128_vm13, %v671_v60, 0.0  ;;  %v375_v48 = vsel %vm952_vm14, %v622_v42, %v359_v31  ;;  %vm1269_vm1 = vcmp.eq.s32.totalorder %v633_v50, %v613_v38  ;;  %v115_v49 = vadd.f32 %v113_v23, %v104_v35 }
  0x36   :  { %vm342_vm15 = vmand %vm1269_vm1, %vm655_vm0  ;;  %v135_v33 = vmul.f32 %v134_v26, %v132_v47  ;;  %vm150_vm4 = vcmp.eq.s32.totalorder %v802_v29, 8  ;;  %v143_v50 = vsel %vm139_vm5, %v743_v13, %v141_v45  ;;  %v152_v56 = vsel %vm139_vm5, %v671_v60, 0.0  ;;  %396 = vmatpush.msra.mxu0 %v375_v48  ;;  %441 = vmatpush.msra.mxu1 %v375_v48 }
  0x37   :  { %v358_v51 = vsel %vm342_vm15, %v636_v52, 0.0  ;;  %vm1007_vm14 = vmand %vm285_vm11, %vm638_vm10  ;;  %vm161_vm13 = vcmp.eq.s32.totalorder %v802_v29, 9  ;;  %v126_v59 = vadd.f32 %v124_v41, %v115_v49  ;;  %v146_v61 = vmul.f32 %v145_v34, %v143_v50 }
  0x38   :  { %v374_v57 = vsel %vm983_vm3, %v622_v42, %v358_v51  ;;  %vm341_vm11 = vmand %vm322_vm6, %vm655_vm0  ;;  %v163_v39 = vsel %vm150_vm4, %v671_v60, 0.0  ;;  %v154_v55 = vsel %vm150_vm4, %v743_v13, %v152_v56  ;;  %vm172_vm6 = vcmp.eq.s32.totalorder %v802_v29, 10 }
  0x39   :  { %v357_v62 = vsel %vm341_vm11, %v636_v52, 0.0  ;;  %vm1033_vm3 = vmand %vm284_vm12, %vm638_vm10  ;;  %v165_v0 = vsel %vm161_vm13, %v743_v13, %v163_v39  ;;  %397 = vmatpush.msra.mxu0 %v374_v57  ;;  %442 = vmatpush.msra.mxu1 %v374_v57  ;;  %v137_v5 = vadd.f32 %v135_v33, %v126_v59  ;;  %v157_v7 = vmul.f32 %v156_v1, %v154_v55 }
  0x3a   :  { %v373_v3 = vsel %vm1007_vm14, %v622_v42, %v357_v62  ;;  %vm340_vm12 = vmand %vm321_vm7, %vm655_vm0  ;;  %v174_v8 = vsel %vm161_vm13, %v671_v60, 0.0  ;;  %v168_v6 = vmul.f32 %v167_v36, %v165_v0  ;;  %vm183_vm7 = vcmp.eq.s32.totalorder %v802_v29, 11 }
  0x3b   :  { %v356_v40 = vsel %vm340_vm12, %v636_v52, 0.0  ;;  %vm1063_vm5 = vmand %vm283_vm8, %vm638_vm10  ;;  %v176_v10 = vsel %vm172_vm6, %v743_v13, %v174_v8  ;;  %398 = vmatpush.msra.mxu0 %v373_v3  ;;  %443 = vmatpush.msra.mxu1 %v373_v3  ;;  %v148_v14 = vadd.f32 %v146_v61, %v137_v5  ;;  %v185_v19 = vsel %vm172_vm6, %v671_v60, 0.0 }
  0x3c   :  { %v372_v11 = vsel %vm1033_vm3, %v622_v42, %v356_v40  ;;  %vm339_vm8 = vmand %vm320_vm2, %vm655_vm0  ;;  %v179_v18 = vmul.f32 %v178_v37, %v176_v10  ;;  %v187_v15 = vsel %vm183_vm7, %v743_v13, %v185_v19  ;;  %v189_v23 = vperm.slane %v772_v20, 3 }
  0x3d   :  { %v355_v2 = vsel %vm339_vm8, %v636_v52, 0.0  ;;  %vm1092_vm1 = vmand %vm282_vm9, %vm638_vm10  ;;  %vm194_vm2 = vcmp.eq.s32.totalorder %v802_v29, 12  ;;  %399 = vmatpush.msra.mxu0 %v372_v11  ;;  %444 = vmatpush.msra.mxu1 %v372_v11  ;;  %vm1278_vm10 = vcmp.eq.s32.totalorder %v740_v12, %v613_v38  ;;  %v159_v32 = vadd.f32 %v157_v7, %v148_v14 }
  0x3e   :  { %v371_v53 = vsel %vm1063_vm5, %v622_v42, %v355_v2  ;;  %vm338_vm9 = vmand %vm1278_vm10, %vm655_vm0  ;;  %v196_v27 = vsel %vm183_vm7, %v671_v60, 0.0  ;;  %v200_v28 = vperm.slane %v772_v20, 4  ;;  %v190_v41 = vmul.f32 %v189_v23, %v187_v15 }
  0x3f   :  { %v354_v35 = vsel %vm338_vm9, %v636_v52, 0.0  ;;  %v198_v58 = vsel %vm194_vm2, %v743_v13, %v196_v27  ;;  %vm205_vm15 = vcmp.eq.s32.totalorder %v802_v29, 13  ;;  %400 = vmatpush.msra.mxu0 %v371_v53  ;;  %445 = vmatpush.msra.mxu1 %v371_v53  ;;  %v170_v12 = vadd.f32 %v168_v6, %v159_v32 }
  0x40   :  { %v370_v38 = vsel %vm1092_vm1, %v622_v42, %v354_v35  ;;  %v201_v43 = vmul.f32 %v200_v28, %v198_v58  ;;  %v207_v52 = vsel %vm194_vm2, %v671_v60, 0.0  ;;  %v211_v44 = vperm.slane %v772_v20, 5 }
  0x41   :  { %v209_v31 = vsel %vm205_vm15, %v743_v13, %v207_v52  ;;  %vm216_vm0 = vcmp.eq.s32.totalorder %v802_v29, 14  ;;  %v218_v47 = vsel %vm205_vm15, %v671_v60, 0.0  ;;  %401 = vmatpush.msra.mxu0 %v370_v38  ;;  %446 = vmatpush.msra.mxu1 %v370_v38  ;;  %v181_v45 = vadd.f32 %v179_v18, %v170_v12 }
  0x42   :  { %v220_v42 = vsel %vm216_vm0, %v743_v13, %v218_v47  ;;  %v222_v48 = vperm.slane %v772_v20, 6  ;;  %vm227_vm4 = vcmp.eq.s32.totalorder %v802_v29, 15  ;;  %v212_v49 = vmul.f32 %v211_v44, %v209_v31 }
  0x43   :  { %v229_v33 = vsel %vm216_vm0, %v671_v60, 0.0  ;;  %v233_v51 = vperm.slane %v772_v20, 7  ;;  %vm61_vm14 = vcmp.eq.s32.totalorder %v804_v30, 0  ;;  %v192_v54 = vadd.f32 %v190_v41, %v181_v45 }
  0x44   :  { %v223_v50 = vmul.f32 %v222_v48, %v220_v42  ;;  %v231_v56 = vsel %vm227_vm4, %v743_v13, %v229_v33  ;;  %vm63_vm13 = vcmp.eq.s32.totalorder %v804_v30, 4294967295  ;;  %vm74_vm11 = vcmp.eq.s32.totalorder %v804_v30, 1 }
  0x45   :  { %v234_v29 = vmul.f32 %v233_v51, %v231_v56  ;;  %v65_v57 = vsel %vm63_vm13, %v671_v60, 0.0  ;;  %v76_v59 = vsel %vm61_vm14, %v671_v60, 0.0  ;;  %v203_v61 = vadd.f32 %v201_v43, %v192_v54 }
  0x46   :  { %v67_v39 = vsel %vm61_vm14, %v743_v13, %v65_v57  ;;  %v78_v62 = vsel %vm74_vm11, %v743_v13, %v76_v59  ;;  %vm85_vm3 = vcmp.eq.s32.totalorder %v804_v30, 2  ;;  %v87_v0 = vsel %vm74_vm11, %v671_v60, 0.0 }
  0x47   :  { %v70_v63 = vmul.f32 %v68_v16, %v67_v39  ;;  %v81_v55 = vmul.f32 %v79_v17, %v78_v62  ;;  %vm96_vm6 = vcmp.eq.s32.totalorder %v804_v30, 3  ;;  %v214_v3 = vadd.f32 %v212_v49, %v203_v61 }
  0x48   :  { %v89_v5 = vsel %vm85_vm3, %v743_v13, %v87_v0  ;;  %v98_v7 = vsel %vm85_vm3, %v671_v60, 0.0  ;;  %vm107_vm12 = vcmp.eq.s32.totalorder %v804_v30, 4  ;;  %v109_v9 = vsel %vm96_vm6, %v671_v60, 0.0 }
  0x49   :  { %v83_v8 = vadd.f32 %v81_v55, %v70_v63  ;;  %v92_v40 = vmul.f32 %v90_v21, %v89_v5  ;;  %v100_v16 = vsel %vm96_vm6, %v743_v13, %v98_v7  ;;  %v225_v17 = vadd.f32 %v223_v50, %v214_v3 }
  0x4a   :  { %v103_v6 = vmul.f32 %v101_v22, %v100_v16  ;;  %v111_v10 = vsel %vm107_vm12, %v743_v13, %v109_v9  ;;  %vm118_vm5 = vcmp.eq.s32.totalorder %v804_v30, 5  ;;  %v120_v18 = vsel %vm107_vm12, %v671_v60, 0.0 }
  0x4b   :  { %v94_v11 = vadd.f32 %v92_v40, %v83_v8  ;;  %v114_v14 = vmul.f32 %v112_v24, %v111_v10  ;;  %vm129_vm7 = vcmp.eq.s32.totalorder %v804_v30, 6  ;;  %v236_v21 = vadd.f32 %v234_v29, %v225_v17 }
  0x4c   :  { %v122_v19 = vsel %vm118_vm5, %v743_v13, %v120_v18  ;;  %v131_v2 = vsel %vm118_vm5, %v671_v60, 0.0  ;;  %vm140_vm8 = vcmp.eq.s32.totalorder %v804_v30, 7  ;;  %v142_v53 = vsel %vm129_vm7, %v671_v60, 0.0 }
  0x4d   :  { %v105_v22 = vadd.f32 %v103_v6, %v94_v11  ;;  %v125_v46 = vmul.f32 %v123_v25, %v122_v19  ;;  %v133_v15 = vsel %vm129_vm7, %v743_v13, %v131_v2  ;;  %402 = vmatmul.f32.vlgmr.msra.gmra.mxu0 %v236_v21  ;;  %v144_v24 = vsel %vm140_vm8, %v743_v13, %v142_v53 }
  0x4e   :  { %vm151_vm1 = vcmp.eq.s32.totalorder %v804_v30, 8  ;;  %v153_v32 = vsel %vm140_vm8, %v671_v60, 0.0  ;;  %v136_v35 = vmul.f32 %v134_v26, %v133_v15  ;;  %vm162_vm2 = vcmp.eq.s32.totalorder %v804_v30, 9 }
  0x4f   :  { %v116_v27 = vadd.f32 %v114_v14, %v105_v22  ;;  %v155_v41 = vsel %vm151_vm1, %v743_v13, %v153_v32  ;;  %v164_v25 = vsel %vm151_vm1, %v671_v60, 0.0  ;;  %vm173_vm10 = vcmp.eq.s32.totalorder %v804_v30, 10 }
  0x50   :  { %v147_v38 = vmul.f32 %v145_v34, %v144_v24  ;;  %v175_v12 = vsel %vm162_vm2, %v671_v60, 0.0  ;;  %v166_v43 = vsel %vm162_vm2, %v743_v13, %v164_v25  ;;  %vm184_vm9 = vcmp.eq.s32.totalorder %v804_v30, 11 }
  0x51   :  { %v127_v58 = vadd.f32 %v125_v46, %v116_v27  ;;  %v158_v26 = vmul.f32 %v156_v1, %v155_v41  ;;  %v186_v31 = vsel %vm173_vm10, %v671_v60, 0.0  ;;  %v177_v47 = vsel %vm173_vm10, %v743_v13, %v175_v12 }
  0x52   :  { %vm195_vm15 = vcmp.eq.s32.totalorder %v804_v30, 12  ;;  %v169_v4 = vmul.f32 %v167_v36, %v166_v43  ;;  %v197_v34 = vsel %vm184_vm9, %v671_v60, 0.0  ;;  %v188_v42 = vsel %vm184_vm9, %v743_v13, %v186_v31 }
  0x53   :  { %v138_v52 = vadd.f32 %v136_v35, %v127_v58  ;;  %vm206_vm0 = vcmp.eq.s32.totalorder %v804_v30, 13  ;;  %v180_v1 = vmul.f32 %v178_v37, %v177_v47  ;;  %v208_v33 = vsel %vm195_vm15, %v671_v60, 0.0 }
  0x54   :  { %v199_v54 = vsel %vm195_vm15, %v743_v13, %v197_v34  ;;  %vm217_vm4 = vcmp.eq.s32.totalorder %v804_v30, 14  ;;  %v191_v36 = vmul.f32 %v189_v23, %v188_v42  ;;  %v219_v56 = vsel %vm206_vm0, %v671_v60, 0.0 }
  0x55   :  { %v149_v45 = vadd.f32 %v147_v38, %v138_v52  ;;  %v210_v29 = vsel %vm206_vm0, %v743_v13, %v208_v33  ;;  %v202_v59 = vmul.f32 %v200_v28, %v199_v54  ;;  %vm228_vm14 = vcmp.eq.s32.totalorder %v804_v30, 15 }
  0x56   :  { %v230_v37 = vsel %vm217_vm4, %v671_v60, 0.0  ;;  %v221_v61 = vsel %vm217_vm4, %v743_v13, %v219_v56  ;;  %v213_v62 = vmul.f32 %v211_v44, %v210_v29 }
  0x57   :  { %v160_v49 = vadd.f32 %v158_v26, %v149_v45  ;;  %v232_v23 = vsel %vm228_vm14, %v743_v13, %v230_v37  ;;  %v224_v55 = vmul.f32 %v222_v48, %v221_v61 }
  0x58   :  { %v235_v28 = vmul.f32 %v233_v51, %v232_v23 }
  0x59   :  { %v171_v50 = vadd.f32 %v169_v4, %v160_v49 }
  0x5b   :  { %v182_v57 = vadd.f32 %v180_v1, %v171_v50 }
  0x5d   :  { %v193_v39 = vadd.f32 %v191_v36, %v182_v57 }
  0x5f   :  { %v204_v63 = vadd.f32 %v202_v59, %v193_v39 }
  0x61   :  { %v215_v0 = vadd.f32 %v213_v62, %v204_v63 }
  0x63   :  { %v226_v3 = vadd.f32 %v224_v55, %v215_v0 }
  0x65   :  { %v237_v30 = vadd.f32 %v235_v28, %v226_v3 }
  0x67   :  { %405 = vmatmul.f32.vlgmr.msra.gmra.mxu1 %v237_v30 }
  0xca   :  { %v403_v60 = vpop.f32.mrf.mxu0 }
  0xcb   :  { %409 = vst [vmem:[#allocation7] sm:$0xff] %v403_v60 }
  0xe4   :  { %v406_v13 = vpop.f32.mrf.mxu1 }
  0xe5   :  { %410 = vst [vmem:[#allocation7 + $0x8] sm:$0xff] %v406_v13 }
  0xe6   :  { %423 = dma.vmem_to_hbm [thread:$0]  %s416_s1, 256, %s418_s23, [#allocation4], %s550_s19, %s550_s19, %s551_s20  }
  0xe7   :  { %546 = dma.done.wait [#allocation4], 256  }
  0xe8   :  { %547 = vsyncadd [#allocation4], 4294967040 }
  0xe9   :  { %428 = vsyncpa [#allocation3], 1 }
  0xea   :  { %429 = vsyncpa [#allocation6], 1 }
  0xeb   :  { %430 = vsyncpa [#allocation4], 1 }

</bundles_post_ra>
